<compile_context>
chip_gen: v5e
topology: v5e:2x2
jax: 0.10.0
libtpu: 0.0.40
codegen_flags: <defaults>
</compile_context>

<pallas_src>
import jax
import jax.numpy as jnp
from jax import lax
from jax.experimental import pallas as pl
from jax.experimental.pallas import tpu as pltpu


def _round_up(x, m):
    return ((x + m - 1) // m) * m


def _linear_lora_kernel(x_ref, w_ref, b_ref, xa_ref, bmat_ref, o_ref, acc_ref):
    """One (tm, tn) output tile of  x @ W^T + b + alpha*(x @ A) @ B, K-tiled."""
    k = pl.program_id(2)

    @pl.when(k == 0)
    def _init():
        # LoRA up-projection + bias: once per (M, N) output tile, NOT per K step.
        lora = jnp.dot(xa_ref[...], bmat_ref[...],
                       preferred_element_type=jnp.float32)        # (tm, tn)
        acc_ref[...] = b_ref[...].astype(jnp.float32) + lora

    # Base path: contract the lane (in_dim) axes of x and W directly (x @ W^T).
    # TODO(synk): if the Mosaic dump shows per-tile vxpose for this contraction,
    # store W pre-transposed as [in_dim, out_dim] once at weight-load time.
    acc_ref[...] += lax.dot_general(
        x_ref[...], w_ref[...], (((1,), (1,)), ((), ())),
        preferred_element_type=jnp.float32)

    @pl.when(k == pl.num_programs(2) - 1)
    def _store():
        o_ref[...] = acc_ref[...].astype(o_ref.dtype)


def linear_with_lora(x, W, b, A, B, alpha, *, tm=512, tn=256, max_tk=2048,
                     compute_dtype=None):
    """y = x @ W^T + b + alpha * (x @ A) @ B

    x: [..., in_dim]; W: [out_dim, in_dim]; b: [out_dim];
    A: [in_dim, rank]; B: [rank, out_dim]; alpha: scalar (python or traced).
    compute_dtype: optional MXU dtype (e.g. jnp.bfloat16) for the big dots;
    accumulation is always f32 and the output keeps x's dtype.
    """
    *lead, in_dim = x.shape
    out_dim, in_dim_w = W.shape
    assert in_dim_w == in_dim
    rank = A.shape[1]

    x2 = x.reshape(-1, in_dim)
    M = x2.shape[0]
    out_dtype = x.dtype

    cd = jnp.dtype(compute_dtype) if compute_dtype is not None else jnp.dtype(x.dtype)
    csize = cd.itemsize
    osize = jnp.dtype(out_dtype).itemsize
    sub = {4: 8, 2: 16, 1: 32}.get(csize, 8)   # packed-sublane multiple

    # --- K (in_dim) tiling: full in_dim when it fits, else a 128-multiple divisor
    #     (keeps VMEM bounded independent of in_dim; no K padding needed). ---
    tk = in_dim
    if in_dim > max_tk and in_dim % 128 == 0:
        t = (max_tk // 128) * 128
        while t >= 128:
            if in_dim % t == 0:
                tk = t
                break
            t -= 128
    # TODO(synk): pad K instead when in_dim is huge and not 128-aligned.
    num_k = in_dim // tk

    # --- Row (M) tiling. ---
    tm = max(sub, _round_up(min(tm, _round_up(M, sub)), sub))

    # --- Output (N) tiling: prefer a 128-multiple tile that divides out_dim
    #     (no per-call weight padding); pad only as a fallback. ---
    if out_dim < 128:
        tn, N_pad = out_dim, out_dim
    else:
        tn_req = max(128, _round_up(tn, 128))
        tn_div = None
        t = min(tn_req, (out_dim // 128) * 128)
        while t >= 128:
            if out_dim % t == 0:
                tn_div = t
                break
            t -= 128
        if tn_div is not None:
            tn, N_pad = tn_div, out_dim
        else:
            tn = min(tn_req, _round_up(out_dim, 128))
            N_pad = _round_up(out_dim, tn)

    # --- Generation-aware VMEM budget; shrink tm if the tile set won't fit. ---
    try:
        vmem_cap = int(pltpu.get_tpu_info().vmem_capacity_bytes)
    except Exception:
        vmem_cap = 64 * 1024 * 1024   # conservative (v7x per-TC)
    budget = int(vmem_cap * 0.8)

    def _est(tm_, tn_, tk_):
        return (2 * (tm_ * tk_ + tn_ * tk_ + tm_ * rank + rank * tn_) * csize
                + 2 * tn_ * 4                       # bias (f32)
                + 2 * tm_ * tn_ * osize             # output tiles
                + tm_ * tn_ * 4)                    # f32 accumulator scratch

    while _est(tm, tn, tk) > budget and tm > sub:
        tm = max(sub, _round_up(tm // 2, sub))

    M_pad = _round_up(M, tm)
    num_m = M_pad // tm
    num_n = N_pad // tn

    # v7x megacore: keep at least one parallel axis with extent >= 2 when possible.
    if num_m == 1 and num_n == 1 and tm >= 2 * sub:
        tm = max(sub, _round_up(tm // 2, sub))
        M_pad = _round_up(M, tm)
        num_m = M_pad // tm

    # --- Grid order: re-stream the operand with the smaller extra-HBM cost. ---
    extra_m_inner = (num_n - 1) * M_pad   # extra x-row reads if M is innermost
    extra_n_inner = (num_m - 1) * N_pad   # extra W-row reads if N is innermost
    m_inner = extra_m_inner <= extra_n_inner

    # --- Padding (activations always; weights only in the ragged-out_dim fallback).
    if M_pad != M:
        x2 = jnp.pad(x2, ((0, M_pad - M), (0, 0)))
    Wp, bp, Bp = W, b, B
    if N_pad != out_dim:
        # Fallback only; in production pre-pad weights once at parameter load.
        Wp = jnp.pad(W, ((0, N_pad - out_dim), (0, 0)))
        bp = jnp.pad(b, (0, N_pad - out_dim))
        Bp = jnp.pad(B, ((0, 0), (0, N_pad - out_dim)))

    # --- LoRA down-projection hoisted out of the kernel (tiny [M_pad, rank]).
    #     alpha is folded here -> stays a runtime value, no recompile per alpha. ---
    alpha_f = jnp.asarray(alpha, jnp.float32)
    xa = (x2.astype(jnp.float32) @ A.astype(jnp.float32)) * alpha_f

    xk = x2.astype(cd)
    Wk = Wp.astype(cd)
    Bk = Bp.astype(cd)
    xak = xa.astype(cd)
    bk = bp.astype(jnp.float32).reshape(1, N_pad)

    est = _est(tm, tn, tk)
    vmem_limit = None
    if est > 12 * 1024 * 1024:
        vmem_limit = min(max(int(est * 1.5), 32 * 1024 * 1024), budget)

    if m_inner:   # W tile resident over the inner M loop
        grid = (num_n, num_m, num_k)
        x_map = lambda j, i, k: (i, k)
        w_map = lambda j, i, k: (j, k)
        b_map = lambda j, i, k: (0, j)
        xa_map = lambda j, i, k: (i, 0)
        bb_map = lambda j, i, k: (0, j)
        o_map = lambda j, i, k: (i, j)
    else:         # x tile resident over the inner N loop
        grid = (num_m, num_n, num_k)
        x_map = lambda i, j, k: (i, k)
        w_map = lambda i, j, k: (j, k)
        b_map = lambda i, j, k: (0, j)
        xa_map = lambda i, j, k: (i, 0)
        bb_map = lambda i, j, k: (0, j)
        o_map = lambda i, j, k: (i, j)

    out = pl.pallas_call(
        _linear_lora_kernel,
        out_shape=jax.ShapeDtypeStruct((M_pad, N_pad), out_dtype),
        grid_spec=pltpu.PrefetchScalarGridSpec(
            num_scalar_prefetch=0,
            grid=grid,
            in_specs=[
                pl.BlockSpec((tm, tk), x_map),      # x rows, K-tiled
                pl.BlockSpec((tn, tk), w_map),      # W out-tile, K-tiled
                pl.BlockSpec((1, tn), b_map),       # bias tile (f32)
                pl.BlockSpec((tm, rank), xa_map),   # hoisted alpha*(x@A)
                pl.BlockSpec((rank, tn), bb_map),   # LoRA B tile
            ],
            out_specs=pl.BlockSpec((tm, tn), o_map),
            scratch_shapes=[pltpu.VMEM((tm, tn), jnp.float32)],
        ),
        compiler_params=pltpu.CompilerParams(
            dimension_semantics=("parallel", "parallel", "arbitrary"),
            vmem_limit_bytes=vmem_limit),
    )(xk, Wk, bk, xak, Bk)

    out = out[:M, :out_dim]
    return out.reshape(*lead, out_dim)


if __name__ == "__main__":
    def ref_fn(x2d, W, b, A, B, alpha):
        return x2d @ W.T + b + alpha * ((x2d @ A) @ B)

    # --- Test 1: small shapes consistent with the module (batch=2, seq=8, hidden=32). ---
    batch, seq, in_dim, out_dim, rank, alpha = 2, 8, 32, 32, 4, 16.0
    keys = jax.random.split(jax.random.PRNGKey(0), 5)
    x = jax.random.normal(keys[0], (batch, seq, in_dim), dtype=jnp.float32)
    W = jax.random.normal(keys[1], (out_dim, in_dim), dtype=jnp.float32) * 0.05
    b = jax.random.normal(keys[2], (out_dim,), dtype=jnp.float32) * 0.05
    # LoRALayer.__init__: A ~ randn(in, rank)/sqrt(rank), B zeros (use nonzero B
    # here so the LoRA path is actually exercised).
    A = jax.random.normal(keys[3], (in_dim, rank), dtype=jnp.float32) / jnp.sqrt(
        jnp.float32(rank))
    B = jax.random.normal(keys[4], (rank, out_dim), dtype=jnp.float32) * 0.05

    out = jax.block_until_ready(linear_with_lora(x, W, b, A, B, alpha))
    ref = ref_fn(x.reshape(-1, in_dim), W, b, A, B, alpha).reshape(batch, seq, out_dim)
    assert out.shape == (batch, seq, out_dim)
    assert jnp.allclose(out, ref, atol=1e-4, rtol=1e-4), "mismatch vs reference (test 1)"

    # --- Test 2: ragged M + out_dim not a lane multiple (pad fallback, multi-tile grid). ---
    M2, in2, out2, rank2, alpha2 = 20, 64, 160, 4, 8.0
    k2 = jax.random.split(jax.random.PRNGKey(1), 5)
    x2 = jax.random.normal(k2[0], (M2, in2), dtype=jnp.float32)
    W2 = jax.random.normal(k2[1], (out2, in2), dtype=jnp.float32) * 0.05
    b2 = jax.random.normal(k2[2], (out2,), dtype=jnp.float32) * 0.05
    A2 = jax.random.normal(k2[3], (in2, rank2), dtype=jnp.float32) / jnp.sqrt(
        jnp.float32(rank2))
    B2 = jax.random.normal(k2[4], (rank2, out2), dtype=jnp.float32) * 0.05

    out2_ = jax.block_until_ready(
        linear_with_lora(x2, W2, b2, A2, B2, alpha2, tm=8, tn=128))
    ref2 = ref_fn(x2, W2, b2, A2, B2, alpha2)
    assert out2_.shape == (M2, out2)
    assert jnp.allclose(out2_, ref2, atol=1e-4, rtol=1e-4), "mismatch vs reference (test 2)"

    print("KERNEL_OK")
</pallas_src>

<mosaic_0001>
module attributes {stable_mosaic.version = 11 : i64} {
  func.func @_linear_lora_kernel(%arg0: i32, %arg1: i32, %arg2: i32, %arg3: memref<8x32xf32, #tpu.memory_space<vmem>>, %arg4: memref<32x32xf32, #tpu.memory_space<vmem>>, %arg5: memref<1x32xf32, #tpu.memory_space<vmem>>, %arg6: memref<8x4xf32, #tpu.memory_space<vmem>>, %arg7: memref<4x32xf32, #tpu.memory_space<vmem>>, %arg8: memref<8x32xf32, #tpu.memory_space<vmem>>, %arg9: memref<8x32xf32, #tpu.memory_space<vmem>>) attributes {dimension_semantics = [#tpu.dimension_semantics<parallel>, #tpu.dimension_semantics<parallel>, #tpu.dimension_semantics<arbitrary>], iteration_bounds = array<i64: 1, 2, 1>, scalar_prefetch = 0 : i64, scratch_operands = 1 : i64, tpu.core_type = #tpu.core_type<tc>, window_params = [{transform_indices = @transform_0, window_bounds = array<i64: 8, 32>}, {transform_indices = @transform_1, window_bounds = array<i64: 32, 32>}, {transform_indices = @transform_2, window_bounds = array<i64: 1, 32>}, {transform_indices = @transform_3, window_bounds = array<i64: 8, 4>}, {transform_indices = @transform_4, window_bounds = array<i64: 4, 32>}, {transform_indices = @transform_5, window_bounds = array<i64: 8, 32>}]} {
    %c0_i32 = arith.constant 0 : i32
    %0 = arith.cmpi eq, %arg2, %c0_i32 : i32
    %1 = arith.extui %0 : i1 to i32
    %c0_i32_0 = arith.constant 0 : i32
    %2 = arith.cmpi ne, %1, %c0_i32_0 : i32
    scf.if %2 {
      %c0_10 = arith.constant 0 : index
      %c0_11 = arith.constant 0 : index
      %12 = vector.load %arg6[%c0_10, %c0_11] : memref<8x4xf32, #tpu.memory_space<vmem>>, vector<8x4xf32>
      %c0_12 = arith.constant 0 : index
      %c0_13 = arith.constant 0 : index
      %13 = vector.load %arg7[%c0_12, %c0_13] : memref<4x32xf32, #tpu.memory_space<vmem>>, vector<4x32xf32>
      %cst_14 = arith.constant dense<0.000000e+00> : vector<8x32xf32>
      %14 = tpu.matmul %12, %13, %cst_14 {dimension_numbers = #tpu.dot_dimension_numbers<[1], [0], [0], [1], [0, 0, 1, 1], [], []>} : vector<8x4xf32>, vector<4x32xf32>, vector<8x32xf32> -> vector<8x32xf32>
      %c0_15 = arith.constant 0 : index
      %c0_16 = arith.constant 0 : index
      %15 = vector.load %arg5[%c0_15, %c0_16] : memref<1x32xf32, #tpu.memory_space<vmem>>, vector<1x32xf32>
      %16 = vector.broadcast %15 : vector<1x32xf32> to vector<8x32xf32>
      %17 = arith.addf %16, %14 : vector<8x32xf32>
      %c0_17 = arith.constant 0 : index
      %c0_18 = arith.constant 0 : index
      %18 = vector.load %arg9[%c0_17, %c0_18] : memref<8x32xf32, #tpu.memory_space<vmem>>, vector<8x32xf32>
      tpu.vector_store %arg9[%c0_17, %c0_18], %17 {strides = array<i32>} : memref<8x32xf32, #tpu.memory_space<vmem>>, vector<8x32xf32>,
    } else {
    }
    %c0 = arith.constant 0 : index
    %c0_1 = arith.constant 0 : index
    %3 = vector.load %arg9[%c0, %c0_1] : memref<8x32xf32, #tpu.memory_space<vmem>>, vector<8x32xf32>
    %c0_2 = arith.constant 0 : index
    %c0_3 = arith.constant 0 : index
    %4 = vector.load %arg3[%c0_2, %c0_3] : memref<8x32xf32, #tpu.memory_space<vmem>>, vector<8x32xf32>
    %c0_4 = arith.constant 0 : index
    %c0_5 = arith.constant 0 : index
    %5 = vector.load %arg4[%c0_4, %c0_5] : memref<32x32xf32, #tpu.memory_space<vmem>>, vector<32x32xf32>
    %cst = arith.constant dense<0.000000e+00> : vector<8x32xf32>
    %6 = tpu.matmul %4, %5, %cst {dimension_numbers = #tpu.dot_dimension_numbers<[1], [1], [0], [0], [0, 0, 1, 0], [], []>} : vector<8x32xf32>, vector<32x32xf32>, vector<8x32xf32> -> vector<8x32xf32>
    %7 = arith.addf %3, %6 : vector<8x32xf32>
    %c0_6 = arith.constant 0 : index
    %c0_7 = arith.constant 0 : index
    %8 = vector.load %arg9[%c0_6, %c0_7] : memref<8x32xf32, #tpu.memory_space<vmem>>, vector<8x32xf32>
    tpu.vector_store %arg9[%c0_6, %c0_7], %7 {strides = array<i32>} : memref<8x32xf32, #tpu.memory_space<vmem>>, vector<8x32xf32>,
    %c0_i32_8 = arith.constant 0 : i32
    %9 = arith.cmpi eq, %arg2, %c0_i32_8 : i32
    %10 = arith.extui %9 : i1 to i32
    %c0_i32_9 = arith.constant 0 : i32
    %11 = arith.cmpi ne, %10, %c0_i32_9 : i32
    scf.if %11 {
      %c0_10 = arith.constant 0 : index
      %c0_11 = arith.constant 0 : index
      %12 = vector.load %arg9[%c0_10, %c0_11] : memref<8x32xf32, #tpu.memory_space<vmem>>, vector<8x32xf32>
      %c0_12 = arith.constant 0 : index
      %c0_13 = arith.constant 0 : index
      %13 = vector.load %arg8[%c0_12, %c0_13] : memref<8x32xf32, #tpu.memory_space<vmem>>, vector<8x32xf32>
      tpu.vector_store %arg8[%c0_12, %c0_13], %12 {strides = array<i32>} : memref<8x32xf32, #tpu.memory_space<vmem>>, vector<8x32xf32>,
    } else {
    }
    return
  }
  func.func @transform_0(%arg0: i32, %arg1: i32, %arg2: i32) -> (i32, i32) {
    %c0_i32 = arith.constant 0 : i32
    return %arg1, %arg2 : i32, i32
  }
  func.func @transform_1(%arg0: i32, %arg1: i32, %arg2: i32) -> (i32, i32) {
    %c0_i32 = arith.constant 0 : i32
    return %arg0, %arg2 : i32, i32
  }
  func.func @transform_2(%arg0: i32, %arg1: i32, %arg2: i32) -> (i32, i32) {
    %c0_i32 = arith.constant 0 : i32
    %c0_i32_0 = arith.constant 0 : i32
    return %c0_i32, %arg0 : i32, i32
  }
  func.func @transform_3(%arg0: i32, %arg1: i32, %arg2: i32) -> (i32, i32) {
    %c0_i32 = arith.constant 0 : i32
    %c0_i32_0 = arith.constant 0 : i32
    return %arg1, %c0_i32 : i32, i32
  }
  func.func @transform_4(%arg0: i32, %arg1: i32, %arg2: i32) -> (i32, i32) {
    %c0_i32 = arith.constant 0 : i32
    %c0_i32_0 = arith.constant 0 : i32
    return %c0_i32, %arg0 : i32, i32
  }
  func.func @transform_5(%arg0: i32, %arg1: i32, %arg2: i32) -> (i32, i32) {
    %c0_i32 = arith.constant 0 : i32
    return %arg1, %arg0 : i32, i32
  }
}

</mosaic_0001>

<bundles_post_ra>
// kernel: tpu_custom_call.1
= control target key start
LH: loop header
LB: loop body
LE: loop exit
PB: predicated region body
PF: predicated region fallthrough
CT: control target
= control target key end

     0   :  { %10 = vsyncpa [#allocation4], 0  ;;  %s921_s0 = inlined_call_operand.vmem [shape: f32[16,32], index: 0, kind: input, shape index: {}]   ;;  %s922_s1 = inlined_call_operand.hbm [shape: f32[32,32], index: 1, kind: input, shape index: {}]   ;;  %s923_s2 = inlined_call_operand.vmem [shape: f32[1,32], index: 2, kind: input, shape index: {}]   ;;  %s924_s3 = inlined_call_operand.vmem [shape: f32[16,4], index: 3, kind: input, shape index: {}]   ;;  %s925_s4 = inlined_call_operand.vmem [shape: f32[4,32], index: 4, kind: input, shape index: {}]   ;;  %s926_s5 = inlined_call_operand.hbm [shape: f32[16,32], index: 5, kind: output, shape index: {}]  }
   0x1   :  { %11 = vsyncpa [#allocation5], 0 }
   0x2   :  { %13 = vsyncpa [#allocation5 + $0x1], 0  ;;  %s804_s18 = smov 0   ;;  %s806_s19 = smov 0  }
   0x3   :  { %s808_s20 = smov 0   ;;  %s810_s21 = smov 0  }
   0x4   :  { %s812_s22 = smov 0   ;;  %s814_s23 = smov 0  }
   0x5 LB: > { %s565_s24 = sadd.s32 4294967295, %s769_s23   ;;  %s566_s25 = sadd.s32 4294967294, %s769_s23   ;;  %s769_s23 = sphi %s814_s23, %s19_s23   ;;  %s765_s22 = sphi %s812_s22, %s933_s22   ;;  %s761_s21 = sphi %s810_s21, %s932_s21   ;;  %s757_s20 = sphi %s808_s20, %s931_s20   ;;  %s753_s19 = sphi %s806_s19, %s930_s19   ;;  %s749_s18 = sphi %s804_s18, %s929_s18  }
   0x6   : > { %s34_s26 = sadd.s32 1, %s765_s22  ;;  %s181_s27 = sadd.s32 1, %s757_s20 }
   0x7   : > { %p36_p0 = scmp.ge.s32.totalorder %s34_s26, 2  ;;  %p191_p1 = scmp.ne.s32.totalorder %s757_s20, %s753_s19 }
   0x8   : > { %p192_p2 = scmp.eq.s32.totalorder %s565_s24, 1  ;;  %p197_p3 = scmp.ne.s32.totalorder %s753_s19, %s749_s18 }
   0x9   : > { %s935_s26 = smov (%p36_p0, %s34_s26), 0  ;;  %p198_p5 = scmp.eq.s32.totalorder %s566_s25, 1 }
   0xa   : > { %p844_p4 = por %p192_p2, %p191_p1  ;;  %s176_s29 = ssub.s32 %s765_s22, %s935_s26 }
   0xb   : > { %p567_p6 = scmp.ge.s32.totalorder %s769_s23, 1  ;;  %p179_p7 = scmp.eq.s32.totalorder %s176_s29, 0 }
   0xc   : > { %p851_p8 = por %p198_p5, %p197_p3  ;;  %p205_p9 = scmp.lt.s32.totalorder %s769_s23, 3 }
   0xd   : > { %s857_s6 = scalar_select %p179_p7, %s757_s20, %s181_s27  }
   0xe   : > { %p206_p10 = pnand %p567_p6, %p205_p9  ;;  %p602_p11 = scmp.eq.s32.totalorder %s565_s24, 0 }
   0xf   : > { %s220_s9 = sshll.u32 %s922_s1, 4  ;;  %s771_s10 = smov [#allocation3]   ;;  %s221_s9 = int_to_ptr.hbm [resolvable:$true] %s220_s9 }
  0x10   : > { %p594_p12 = pneg %p206_p10  ;;  %s222_s11 = sshll.u32 %s771_s10, 4  ;;  %s223_s11 = int_to_ptr.vmem [resolvable:$true] %s222_s11 }
  0x11   : > { %s772_s12 = smov 128   ;;  %s773_s13 = smov 8  }
  0x12   : > { %p595_p13 = pnand %p602_p11, %p594_p12  ;;  %268 = sbr.rel (%p206_p10) target bundleno = 180 (0xb4), region = 40 }
  0x14   : > { %597 = dma.hbm_to_vmem [thread:$0]  (!%p595_p13), %s221_s9, 512, %s223_s11, [#allocation4], %s772_s12, %s772_s12, %s773_s13  }
  0x17   : > { %740 = dma.done.wait (%p602_p11), [#allocation4], 512  }
  0x18   : > { %742 = vsyncadd (%p602_p11), [#allocation4], 4294966784  ;;  %p310_p0 = scmp.lt.s32.totalorder %s761_s21, 1  ;;  %vm368_vm0 = vcmask 261120   ;;  %vm339_vm1 = vcmask 1043456   ;;  %vm335_vm2 = vcmask 31744  }
  0x19   : > { %v375_v0 = vld [vmem:[#allocation3 + $0x18] sm:$0xff]  ;;  %v374_v3 = vld [vmem:[#allocation3 + $0x10] sm:$0xff]  ;;  %v373_v4 = vld [vmem:[#allocation3 + $0x8] sm:$0xff]  ;;  %s307_s11 = sand.u32 1, %s753_s19   ;;  %s585_s13 = sshll.u32 %s761_s21, 3 }
  0x1a   : > { %s311_s14 = scalar_select %p310_p0, %s761_s21, 1  ;;  %v334_v1 = vld [vmem:[%s925_s4] sm:$0xf]  ;;  %579 = vmatpush.xpose.msk.msra.mxu1 %vm368_vm0, %v375_v0  ;;  %v372_v5 = vld [vmem:[#allocation3] sm:$0xff] }
  0x1b   : > { %577 = vmatpush.msk.msra.mxu0 %vm339_vm1, %v334_v1  ;;  %v656_v7 = vld [vmem:[%s923_s2] ss:$0 sm:$0xff]  ;;  %s574_s12 = sshll.u32 %s307_s11, 3  ;;  %s431_s16 = scalar_lea.hbm %s926_s5, %s585_s13 }
  0x1c   : > { %s575_s15 = sshll.u32 %s311_s14, 3  ;;  %s309_s17 = scalar_lea.vmem [#allocation6], %s574_s12 }
  0x1d   : > { %s324_s24 = scalar_lea.vmem %s924_s3, %s575_s15  ;;  %s316_s8 = scalar_lea.vmem %s921_s0, %s575_s15 }
  0x1e   : > { %v333_v2 = vld [vmem:[%s324_s24] sm:$0xff]  ;;  %580 = vmatpush.xpose.msk.msra.mxu1 %vm368_vm0, %v374_v3  ;;  %s433_s24 = sshll.u32 %s309_s17, 4  ;;  %s435_s25 = sshll.u32 %s431_s16, 4  ;;  %s434_s24 = int_to_ptr.vmem [resolvable:$true] %s433_s24  ;;  %s436_s25 = int_to_ptr.hbm [resolvable:$true] %s435_s25 }
  0x1f   : > { %578 = vmatmul.msk.f32.vlgmr.msra.gmra.mxu0 %vm335_vm2, %v333_v2  ;;  %v371_v6 = vld [vmem:[%s316_s8] sm:$0xff]  ;;  %s420_s27 = scalar_lea.sflag [#allocation5], %s307_s11  ;;  %s701_s29 = sshra.s32 %s436_s25, 4  ;;  %s702_s29 = int_to_ptr.hbm [resolvable:$true] %s701_s29 }
  0x20   : > { %s703_s21 = scalar_lea.hbm %s702_s29, 8  ;;  %s707_s9 = scalar_lea.hbm %s926_s5, 16 }
  0x21   : > { %p704_p1 = scmp.ne.s32.totalorder %s702_s29, %s703_s21  ;;  %p708_p5 = scmp.lt.s32.totalorder %s702_s29, %s926_s5 }
  0x22   : > { %581 = vmatpush.xpose.msk.msra.mxu1 %vm368_vm0, %v373_v4  ;;  %p709_p6 = scmp.lt.s32.totalorder %s707_s9, %s703_s21 }
  0x23   : > { %p705_p2 = pnand %p704_p1, %p844_p4 }
  0x24   : > { %p710_p7 = por %p709_p6, %p708_p5 }
  0x25   : > { %p706_p3 = pneg %p705_p2 }
  0x26   : > { %582 = vmatpush.xpose.msk.msra.mxu1 %vm368_vm0, %v372_v5 }
  0x27   : > { %p711_p9 = pnand %p710_p7, %p706_p3 }
  0x29   : > { %583 = vmatmul.msk.f32.vlgmr.msra.gmra.mxu1 %vm368_vm0, %v371_v6 }
  0x9c   : > { %v360_v8 = vpop.f32.mrf.mxu0 }
  0x9d   : > { %v367_v9 = vadd.f32 %v656_v7, %v360_v8 }
  0x9f   : > { %369 = vst.msk [vmem:[#allocation2] sm:$0xff] %vm368_vm0, %v367_v9 }
  0xa6   : > { %v370_v10 = vld [vmem:[#allocation2] sm:$0xff]  ;;  %v409_v11 = vpop.f32.mrf.mxu1 }
  0xa7   : > { %v412_v12 = vadd.f32 %v409_v11, %v370_v10 }
  0xa9   : > { %413 = vst.msk [vmem:[#allocation2] sm:$0xff] %vm368_vm0, %v412_v12 }
  0xb0   : > { %v417_v13 = vld [vmem:[#allocation2] sm:$0xff] }
  0xb1   : > { %418 = vst.msk [vmem:[%s309_s17] sm:$0xff] %vm368_vm0, %v417_v13 }
  0xb2   : > { %714 = shalt.err (!%p711_p9)
}
  0xb3   : > { %592 = dma.vmem_to_hbm [thread:$0]  (%p844_p4), %s434_s24, 128, %s436_s25, %s420_s27  }
  0xb4 PF: > { %p604_p10 = scmp.ge.s32.totalorder %s769_s23, 2  ;;  %s447_s11 = sand.u32 1, %s749_s18  }
  0xb5   : > { %s448_s13 = scalar_lea.sflag [#allocation5], %s447_s11 }
  0xb6   : > { %p599_p11 = pnand %p604_p10, %p851_p8 }
  0xb8   : > { %p600_p12 = pneg %p599_p11 }
  0xba   : > { %744 = dma.done.wait (%p600_p12), %s448_s13, 128  }
  0xbb   : > { %746 = vsyncadd (%p600_p12), %s448_s13, 4294967168  ;;  %s19_s23 = sadd.s32 1, %s769_s23   ;;  %s929_s18 = smov %s753_s19 }
  0xbc   : > { %p16_p13 = scmp.ge.s32.totalorder %s19_s23, 4   ;;  %s930_s19 = smov %s757_s20 }
  0xbd   : > { %s931_s20 = smov %s857_s6  ;;  %s932_s21 = smov %s765_s22 }
  0xbe   : > { %s933_s22 = smov %s935_s26  ;;  %18 = sbr.rel (!%p16_p13) target bundleno = 5 (0x5), region = 98 }
  0xc3   :  { %454 = vsyncpa [#allocation4], 1 }
  0xc4   :  { %456 = vsyncpa [#allocation4 + $0x1], 1 }
  0xc5   :  { %457 = vsyncpa [#allocation5], 1 }
  0xc6   :  { %459 = vsyncpa [#allocation5 + $0x1], 1 }

</bundles_post_ra>
